<compile_context>
chip_gen: v6e
topology: v6e:2x2x1
jax: 0.10.0
libtpu: 0.0.40
codegen_flags: <defaults>
</compile_context>

<pallas_src>
import jax
import jax.numpy as jnp
import numpy as np
from jax.experimental import pallas as pl
from jax.experimental.pallas import tpu as pltpu


def _log_sigmoid(x):
    # numerically stable logsigmoid(x) = -softplus(-x)
    return jnp.minimum(x, 0.0) - jnp.log1p(jnp.exp(-jnp.abs(x)))


def sgns_loss_kernel(center_ref, target_ref, negs_ref,   # VMEM int32 index blocks
                     emb_v_ref, emb_u_ref,               # VMEM embedding tables
                     out_ref):                           # SMEM (1,) f32 loss
    B = center_ref.shape[0]
    K = negs_ref.shape[1]
    V = emb_u_ref.shape[0]

    center = center_ref[...]                              # (B, 1) int32
    target = target_ref[...]                              # (B, 1) int32
    negs = negs_ref[...]                                  # (B, K) int32

    # One-hot / count selection matrices built with iota compares (pure VPU).
    vocab_iota = jax.lax.broadcasted_iota(jnp.int32, (B, V), 1)      # (B, V)
    onehot_c = (vocab_iota == center).astype(jnp.float32)            # (B, V)
    onehot_t = (vocab_iota == target).astype(jnp.float32)            # (B, V)

    # Negative COUNT matrix: sum_k onehot(neg[b, k]).  The subsequent matmul
    # then yields sum_k u[neg_bk] directly (the K rows are pre-summed "for
    # free" inside the MXU pass).  K is tiny here; a static unroll is fine.
    # TODO(synk): switch to lax.fori_loop(..., unroll=True) for large K.
    counts_n = (vocab_iota == negs[:, 0:1]).astype(jnp.float32)
    for k in range(1, K):
        counts_n = counts_n + (vocab_iota == negs[:, k:k + 1]).astype(jnp.float32)

    # MXU gathers.  Center uses emb_v; target + negatives share emb_u, so
    # fuse them into a single (2B, V) x (V, D) systolic pass.
    c = jnp.dot(onehot_c, emb_v_ref[...],
                preferred_element_type=jnp.float32)                  # (B, D)
    tn = jnp.dot(jnp.concatenate([onehot_t, counts_n], axis=0),
                 emb_u_ref[...],
                 preferred_element_type=jnp.float32)                 # (2B, D)
    t = tn[:B]                                                       # (B, D)
    n = tn[B:]                                                       # (B, D) summed negatives

    # VPU multiply + lane reduce for the scores; the negation of the negative
    # embeddings is folded into the logsigmoid argument.
    pos = jnp.sum(t * c, axis=-1, keepdims=True)                     # (B, 1)
    neg = jnp.sum(n * c, axis=-1, keepdims=True)                     # (B, 1)

    loss = _log_sigmoid(pos) + _log_sigmoid(-neg)                    # (B, 1)
    out_ref[0] = -jnp.sum(loss) * (1.0 / B)                          # scalar -> SMEM


def skipgram_neg_sampling_loss(emb_v, emb_u, center_words, target_words,
                               negative_words):
    """Forward of SkipgramNegSampling. Returns the scalar loss.

    center_words:   (B, 1) int32 indices
    target_words:   (B, 1) int32 indices
    negative_words: (B, K) int32 indices
    """
    B = center_words.shape[0]
    K = negative_words.shape[1]

    center = center_words.reshape(B, 1).astype(jnp.int32)
    target = target_words.reshape(B, 1).astype(jnp.int32)
    negs = negative_words.reshape(B, K).astype(jnp.int32)

    out = pl.pallas_call(
        sgns_loss_kernel,
        out_shape=jax.ShapeDtypeStruct((1,), jnp.float32),
        in_specs=[
            pl.BlockSpec(memory_space=pltpu.MemorySpace.VMEM),   # center indices
            pl.BlockSpec(memory_space=pltpu.MemorySpace.VMEM),   # target indices
            pl.BlockSpec(memory_space=pltpu.MemorySpace.VMEM),   # negative indices
            pl.BlockSpec(memory_space=pltpu.MemorySpace.VMEM),   # embedding_v table
            pl.BlockSpec(memory_space=pltpu.MemorySpace.VMEM),   # embedding_u table
        ],
        out_specs=pl.BlockSpec(memory_space=pltpu.MemorySpace.SMEM),
    )(center, target, negs, emb_v, emb_u)
    return out[0]


def _reference(emb_v, emb_u, center, target, negs):
    """NumPy reference mirroring the PyTorch forward exactly."""
    B = center.shape[0]
    c = emb_v[center.reshape(B)][:, None, :]                # (B, 1, D)
    t = emb_u[target.reshape(B)][:, None, :]                # (B, 1, D)
    n = -emb_u[negs]                                        # (B, K, D)
    pos = np.einsum('bid,bjd->bij', t, c).squeeze(2)        # (B, 1)
    neg = np.einsum('bkd,bjd->bkj', n, c).squeeze(2).sum(1).reshape(B, 1)

    def ls(x):
        return np.minimum(x, 0.0) - np.log1p(np.exp(-np.abs(x)))

    loss = ls(pos) + ls(neg)
    return -loss.mean()


if __name__ == "__main__":
    vocab_size, projection_dim = 50, 32
    B, K = 8, 5

    key = jax.random.PRNGKey(0)
    k_v, k_u, k_c, k_t, k_n = jax.random.split(key, 5)

    initrange = (2.0 / (vocab_size + projection_dim)) ** 0.5
    # Deterministic synthetic init (module zero-inits embedding_u; use a
    # nonzero deterministic init so the kernel does nontrivial math).
    emb_v = jax.random.uniform(k_v, (vocab_size, projection_dim),
                               jnp.float32, -initrange, initrange)
    emb_u = jax.random.uniform(k_u, (vocab_size, projection_dim),
                               jnp.float32, -initrange, initrange)

    center = jax.random.randint(k_c, (B, 1), 0, vocab_size, dtype=jnp.int32)
    target = jax.random.randint(k_t, (B, 1), 0, vocab_size, dtype=jnp.int32)
    negs = jax.random.randint(k_n, (B, K), 0, vocab_size, dtype=jnp.int32)

    loss_fn = jax.jit(skipgram_neg_sampling_loss)
    loss = loss_fn(emb_v, emb_u, center, target, negs)
    loss = jax.block_until_ready(loss)

    ref = _reference(np.asarray(emb_v), np.asarray(emb_u),
                     np.asarray(center), np.asarray(target), np.asarray(negs))
    assert np.allclose(float(loss), float(ref), rtol=1e-5, atol=1e-5), (loss, ref)
    print("KERNEL_OK")
</pallas_src>

<mosaic_0001>
module attributes {stable_mosaic.version = 11 : i64} {
  func.func @sgns_loss_kernel(%arg0: memref<8x1xi32, #tpu.memory_space<vmem>>, %arg1: memref<8x1xi32, #tpu.memory_space<vmem>>, %arg2: memref<8x5xi32, #tpu.memory_space<vmem>>, %arg3: memref<50x32xf32, #tpu.memory_space<vmem>>, %arg4: memref<50x32xf32, #tpu.memory_space<vmem>>, %arg5: memref<1xf32, #tpu.memory_space<smem>>) attributes {dimension_semantics = [], scalar_prefetch = 0 : i64, scratch_operands = 0 : i64, tpu.core_type = #tpu.core_type<tc>} {
    %c0 = arith.constant 0 : index
    %c0_0 = arith.constant 0 : index
    %0 = vector.load %arg0[%c0, %c0_0] : memref<8x1xi32, #tpu.memory_space<vmem>>, vector<8x1xi32>
    %c0_1 = arith.constant 0 : index
    %c0_2 = arith.constant 0 : index
    %1 = vector.load %arg1[%c0_1, %c0_2] : memref<8x1xi32, #tpu.memory_space<vmem>>, vector<8x1xi32>
    %c0_3 = arith.constant 0 : index
    %c0_4 = arith.constant 0 : index
    %2 = vector.load %arg2[%c0_3, %c0_4] : memref<8x5xi32, #tpu.memory_space<vmem>>, vector<8x5xi32>
    %3 = tpu.iota {dimensions = array<i32: 1>} : vector<8x50xi32>
    %4 = vector.broadcast %0 : vector<8x1xi32> to vector<8x50xi32>
    %5 = arith.cmpi eq, %3, %4 : vector<8x50xi32>
    %6 = arith.extui %5 : vector<8x50xi1> to vector<8x50xi32>
    %7 = arith.sitofp %6 : vector<8x50xi32> to vector<8x50xf32>
    %8 = vector.broadcast %1 : vector<8x1xi32> to vector<8x50xi32>
    %9 = arith.cmpi eq, %3, %8 : vector<8x50xi32>
    %10 = arith.extui %9 : vector<8x50xi1> to vector<8x50xi32>
    %11 = arith.sitofp %10 : vector<8x50xi32> to vector<8x50xf32>
    %12 = vector.extract_strided_slice %2 {offsets = [0, 0], sizes = [8, 1], strides = [1, 1]} : vector<8x5xi32> to vector<8x1xi32>
    %13 = vector.broadcast %12 : vector<8x1xi32> to vector<8x50xi32>
    %14 = arith.cmpi eq, %3, %13 : vector<8x50xi32>
    %15 = arith.extui %14 : vector<8x50xi1> to vector<8x50xi32>
    %16 = arith.sitofp %15 : vector<8x50xi32> to vector<8x50xf32>
    %17 = vector.extract_strided_slice %2 {offsets = [0, 1], sizes = [8, 1], strides = [1, 1]} : vector<8x5xi32> to vector<8x1xi32>
    %18 = vector.broadcast %17 : vector<8x1xi32> to vector<8x50xi32>
    %19 = arith.cmpi eq, %3, %18 : vector<8x50xi32>
    %20 = arith.extui %19 : vector<8x50xi1> to vector<8x50xi32>
    %21 = arith.sitofp %20 : vector<8x50xi32> to vector<8x50xf32>
    %22 = arith.addf %16, %21 : vector<8x50xf32>
    %23 = vector.extract_strided_slice %2 {offsets = [0, 2], sizes = [8, 1], strides = [1, 1]} : vector<8x5xi32> to vector<8x1xi32>
    %24 = vector.broadcast %23 : vector<8x1xi32> to vector<8x50xi32>
    %25 = arith.cmpi eq, %3, %24 : vector<8x50xi32>
    %26 = arith.extui %25 : vector<8x50xi1> to vector<8x50xi32>
    %27 = arith.sitofp %26 : vector<8x50xi32> to vector<8x50xf32>
    %28 = arith.addf %22, %27 : vector<8x50xf32>
    %29 = vector.extract_strided_slice %2 {offsets = [0, 3], sizes = [8, 1], strides = [1, 1]} : vector<8x5xi32> to vector<8x1xi32>
    %30 = vector.broadcast %29 : vector<8x1xi32> to vector<8x50xi32>
    %31 = arith.cmpi eq, %3, %30 : vector<8x50xi32>
    %32 = arith.extui %31 : vector<8x50xi1> to vector<8x50xi32>
    %33 = arith.sitofp %32 : vector<8x50xi32> to vector<8x50xf32>
    %34 = arith.addf %28, %33 : vector<8x50xf32>
    %35 = vector.extract_strided_slice %2 {offsets = [0, 4], sizes = [8, 1], strides = [1, 1]} : vector<8x5xi32> to vector<8x1xi32>
    %36 = vector.broadcast %35 : vector<8x1xi32> to vector<8x50xi32>
    %37 = arith.cmpi eq, %3, %36 : vector<8x50xi32>
    %38 = arith.extui %37 : vector<8x50xi1> to vector<8x50xi32>
    %39 = arith.sitofp %38 : vector<8x50xi32> to vector<8x50xf32>
    %40 = arith.addf %34, %39 : vector<8x50xf32>
    %c0_5 = arith.constant 0 : index
    %c0_6 = arith.constant 0 : index
    %41 = vector.load %arg3[%c0_5, %c0_6] : memref<50x32xf32, #tpu.memory_space<vmem>>, vector<50x32xf32>
    %cst = arith.constant dense<0.000000e+00> : vector<8x32xf32>
    %42 = tpu.matmul %7, %41, %cst {dimension_numbers = #tpu.dot_dimension_numbers<[1], [0], [0], [1], [0, 0, 1, 1], [], []>} : vector<8x50xf32>, vector<50x32xf32>, vector<8x32xf32> -> vector<8x32xf32>
    %43 = tpu.concatenate %11, %40 in 0 : vector<8x50xf32>, vector<8x50xf32> -> vector<16x50xf32>
    %c0_7 = arith.constant 0 : index
    %c0_8 = arith.constant 0 : index
    %44 = vector.load %arg4[%c0_7, %c0_8] : memref<50x32xf32, #tpu.memory_space<vmem>>, vector<50x32xf32>
    %cst_9 = arith.constant dense<0.000000e+00> : vector<16x32xf32>
    %45 = tpu.matmul %43, %44, %cst_9 {dimension_numbers = #tpu.dot_dimension_numbers<[1], [0], [0], [1], [0, 0, 1, 1], [], []>} : vector<16x50xf32>, vector<50x32xf32>, vector<16x32xf32> -> vector<16x32xf32>
    %46 = vector.extract_strided_slice %45 {offsets = [0, 0], sizes = [8, 32], strides = [1, 1]} : vector<16x32xf32> to vector<8x32xf32>
    %47 = vector.extract_strided_slice %45 {offsets = [8, 0], sizes = [8, 32], strides = [1, 1]} : vector<16x32xf32> to vector<8x32xf32>
    %48 = arith.mulf %46, %42 : vector<8x32xf32>
    %cst_10 = arith.constant dense<0.000000e+00> : vector<8xf32>
    %49 = vector.multi_reduction <add>, %48, %cst_10 [1] : vector<8x32xf32> to vector<8xf32>
    %50 = vector.shape_cast %49 : vector<8xf32> to vector<8x1xf32>
    %51 = arith.mulf %47, %42 : vector<8x32xf32>
    %cst_11 = arith.constant dense<0.000000e+00> : vector<8xf32>
    %52 = vector.multi_reduction <add>, %51, %cst_11 [1] : vector<8x32xf32> to vector<8xf32>
    %53 = vector.shape_cast %52 : vector<8xf32> to vector<8x1xf32>
    %cst_12 = arith.constant 0.000000e+00 : f32
    %54 = vector.broadcast %cst_12 : f32 to vector<8x1xf32>
    %55 = arith.minimumf %50, %54 : vector<8x1xf32>
    %56 = math.absf %50 : vector<8x1xf32>
    %cst_13 = arith.constant 0.000000e+00 : f32
    %57 = vector.broadcast %cst_13 : f32 to vector<8x1xf32>
    %58 = arith.subf %57, %56 : vector<8x1xf32>
    %59 = math.exp %58 : vector<8x1xf32>
    %60 = math.log1p %59 : vector<8x1xf32>
    %61 = arith.subf %55, %60 : vector<8x1xf32>
    %cst_14 = arith.constant 0.000000e+00 : f32
    %62 = vector.broadcast %cst_14 : f32 to vector<8x1xf32>
    %63 = arith.subf %62, %53 : vector<8x1xf32>
    %cst_15 = arith.constant 0.000000e+00 : f32
    %64 = vector.broadcast %cst_15 : f32 to vector<8x1xf32>
    %65 = arith.minimumf %63, %64 : vector<8x1xf32>
    %66 = math.absf %63 : vector<8x1xf32>
    %cst_16 = arith.constant 0.000000e+00 : f32
    %67 = vector.broadcast %cst_16 : f32 to vector<8x1xf32>
    %68 = arith.subf %67, %66 : vector<8x1xf32>
    %69 = math.exp %68 : vector<8x1xf32>
    %70 = math.log1p %69 : vector<8x1xf32>
    %71 = arith.subf %65, %70 : vector<8x1xf32>
    %72 = arith.addf %61, %71 : vector<8x1xf32>
    %73 = vector.shape_cast %72 : vector<8x1xf32> to vector<1x8x1xf32>
    %cst_17 = arith.constant dense<0.000000e+00> : vector<1xf32>
    %74 = vector.multi_reduction <add>, %73, %cst_17 [1, 2] : vector<1x8x1xf32> to vector<1xf32>
    %75 = vector.shape_cast %74 : vector<1xf32> to vector<1x1x1xf32>
    %76 = vector.extract %75[0, 0, 0] : f32 from vector<1x1x1xf32>
    %cst_18 = arith.constant 0.000000e+00 : f32
    %77 = arith.subf %cst_18, %76 : f32
    %cst_19 = arith.constant 1.250000e-01 : f32
    %78 = arith.mulf %77, %cst_19 : f32
    %c0_20 = arith.constant 0 : index
    %79 = memref.load %arg5[%c0_20] : memref<1xf32, #tpu.memory_space<smem>>
    memref.store %78, %arg5[%c0_20] : memref<1xf32, #tpu.memory_space<smem>>
    return
  }
}

</mosaic_0001>

<bundles_post_ra>
// kernel: skipgram_neg_sampling_loss.1
= control target key start
LH: loop header
LB: loop body
LE: loop exit
PB: predicated region body
PF: predicated region fallthrough
CT: control target
= control target key end

     0   :  { %v416_v1 = vmov 2   ;;  %v417_v2 = vmov 0   ;;  %vm83_vm0 = vcmask 1041408   ;;  %v418_v6 = vmov 0.0   ;;  %s523_s0 = inlined_call_operand.vmem [shape: s32[8,1], index: 0, kind: input, shape index: {}]   ;;  %s524_s1 = inlined_call_operand.vmem [shape: s32[8,1], index: 1, kind: input, shape index: {}]   ;;  %s525_s2 = inlined_call_operand.vmem [shape: s32[8,5], index: 2, kind: input, shape index: {}]   ;;  %s526_s3 = inlined_call_operand.vmem [shape: f32[50,32], index: 3, kind: input, shape index: {}]   ;;  %s527_s4 = inlined_call_operand.vmem [shape: f32[50,32], index: 4, kind: input, shape index: {}]   ;;  %s528_s5 = inlined_call_operand.hbm [shape: f32[1], index: 5, kind: output, shape index: {}]  }
   0x1   :  { %v23_v0 = vld [vmem:[%s525_s2] sm:$0xff]  ;;  %392 = vset.pattern.permute.xlu1 %v416_v1  ;;  %390 = vset.pattern.permute.xlu0 %v417_v2  ;;  %v163_v3 = vld [vmem:[%s527_s4 + $0x30] sm:$0x3]  ;;  %v162_v4 = vld [vmem:[%s527_s4 + $0x28] sm:$0xff] }
   0x2   :  { %52 = vperm.xlu1 %392, %v23_v0   ;;  %39 = vperm.xlu0 %390, %v23_v0   ;;  %v78_v5 = vld [vmem:[%s526_s3 + $0x30] sm:$0x3] }
   0x3   :  { %363 = vmatprep.subr.msk.mxu1 %vm83_vm0, %v163_v3  ;;  %346 = vmatprep.subr.mxu0 %v418_v6 }
   0x4   :  { %10 = vsyncpa [#allocation3], 0  ;;  %364 = vmatpush3.msk.msra.mxu1 %vm83_vm0, %v163_v3  ;;  %347 = vmatpush3.msk.msra.mxu0 %vm83_vm0, %v78_v5  ;;  %v77_v7 = vld [vmem:[%s526_s3 + $0x28] sm:$0xff]  ;;  %v419_v8 = vmov 3   ;;  %v420_v9 = vmov 1   ;;  %v161_v10 = vld [vmem:[%s527_s4 + $0x20] sm:$0xff]  ;;  %v24_v23 = vlaneseq }
   0x5   :  { %365 = vmatprep.subr.mxu1 %v162_v4  ;;  %348 = vmatprep.subr.mxu0 %v418_v6  ;;  %v76_v11 = vld [vmem:[%s526_s3 + $0x20] sm:$0xff]  ;;  %v160_v13 = vld [vmem:[%s527_s4 + $0x18] sm:$0xff]  ;;  %v421_v14 = vmov 4   ;;  %v159_v16 = vld [vmem:[%s527_s4 + $0x10] sm:$0xff]  ;;  %vm422_vm1 = vmmov 0   ;;  %vm79_vm6 = vcmask 408576  }
   0x6   :  { %393 = vset.pattern.permute.xlu1 %v419_v8  ;;  %391 = vset.pattern.permute.xlu0 %v420_v9  ;;  %v22_v12 = vld [vmem:[%s524_s1] sm:$0xff]  ;;  %v75_v15 = vld [vmem:[%s526_s3 + $0x18] sm:$0xff]  ;;  %v158_v18 = vld [vmem:[%s527_s4 + $0x8] sm:$0xff]  ;;  %v25_v26 = vand.u32 127, %v24_v23  ;;  %vm249_vm10 = vcmask 261120   ;;  %vm289_vm13 = vcmask 7168  }
   0x7   :  { %59 = vperm.xlu1 %393, %v23_v0   ;;  %45 = vperm.xlu0 %391, %v23_v0   ;;  %v21_v17 = vld [vmem:[%s523_s0] sm:$0xff]  ;;  %v74_v19 = vld [vmem:[%s526_s3 + $0x10] sm:$0xff]  ;;  %v73_v21 = vld [vmem:[%s526_s3 + $0x8] sm:$0xff]  ;;  %s423_s25 = smov [#allocation2]  }
   0x8   :  { %366 = vmatpush3.msra.mxu1 %v162_v4  ;;  %349 = vmatpush3.msra.mxu0 %v77_v7  ;;  %v157_v20 = vld [vmem:[%s527_s4] sm:$0xff] }
   0x9   :  { %367 = vmatprep.subr.mxu1 %v161_v10  ;;  %350 = vmatprep.subr.mxu0 %v418_v6  ;;  %v72_v22 = vld [vmem:[%s526_s3] sm:$0xff] }
   0xa   :  { %368 = vmatpush3.msra.mxu1 %v161_v10  ;;  %351 = vmatpush3.msra.mxu0 %v76_v11 }
   0xb   :  { %394 = vset.pattern.permute.xlu1 %v421_v14  ;;  %395 = vset.pattern.permute.xlu0 %v417_v2 }
   0xc   :  { %66 = vperm.xlu1 %394, %v23_v0   ;;  %33 = vperm.xlu0 %395, %v22_v12  }
   0xd   :  { %369 = vmatprep.subr.mxu1 %v160_v13  ;;  %352 = vmatprep.subr.mxu0 %v418_v6 }
   0xe   :  { %370 = vmatpush3.msra.mxu1 %v160_v13  ;;  %353 = vmatpush3.msra.mxu0 %v75_v15 }
   0xf   :  { %371 = vmatprep.subr.mxu1 %v159_v16  ;;  %354 = vmatprep.subr.mxu0 %v418_v6 }
  0x10   :  { %396 = vset.pattern.permute.xlu1 %v417_v2  ;;  %372 = vmatpush3.msra.mxu1 %v159_v16 }
  0x11   :  { %27 = vperm.xlu1 %396, %v21_v17   ;;  %373 = vmatprep.subr.mxu1 %v158_v18 }
  0x12   :  { %355 = vmatpush3.msra.mxu0 %v74_v19  ;;  %374 = vmatpush3.msra.mxu1 %v158_v18 }
  0x13   :  { %356 = vmatprep.subr.mxu0 %v418_v6  ;;  %375 = vmatprep.subr.mxu1 %v157_v20 }
  0x14   :  { %357 = vmatpush3.msra.mxu0 %v73_v21  ;;  %376 = vmatpush3.msra.mxu1 %v157_v20 }
  0x15   :  { %358 = vmatprep.subr.mxu0 %v418_v6  ;;  %360 = vmatprep.mubr.msk.f32.mxu0 %vm422_vm1, %v418_v6 }
  0x16   :  { %359 = vmatpush3.msra.mxu0 %v72_v22  ;;  %397 = vset.pattern.permute.xlu0 %v421_v14 }
  0x7d   :  { %v53_v24 = vpop.permute.xlu1 %52  ;;  %v40_v25 = vpop.permute.xlu0 %39 }
  0x7e   :  { %vm41_vm2 = vcmp.eq.s32.totalorder %v25_v26, %v40_v25  ;;  %vm54_vm3 = vcmp.eq.s32.totalorder %v25_v26, %v53_v24 }
  0x7f   :  { %v319_v29 = vsel %vm41_vm2, 1.0, %v418_v6  ;;  %v321_v32 = vsel %vm54_vm3, 1.0, %v418_v6 }
  0x82   :  { %v60_v27 = vpop.permute.xlu1 %59  ;;  %v46_v28 = vpop.permute.xlu0 %45 }
  0x83   :  { %vm47_vm4 = vcmp.eq.s32.totalorder %v25_v26, %v46_v28  ;;  %vm61_vm5 = vcmp.eq.s32.totalorder %v25_v26, %v60_v27 }
  0x84   :  { %v320_v30 = vsel %vm47_vm4, 1.0, %v418_v6  ;;  %v322_v36 = vsel %vm61_vm5, 1.0, %v418_v6 }
  0x85   :  { %v50_v31 = vadd.f32 %v320_v30, %v319_v29 }
  0x87   :  { %v57_v33 = vadd.f32 %v321_v32, %v50_v31  ;;  %v67_v34 = vpop.permute.xlu1 %66  ;;  %v34_v35 = vpop.permute.xlu0 %33 }
  0x88   :  { %vm68_vm7 = vcmp.eq.s32.totalorder %v25_v26, %v67_v34  ;;  %vm35_vm8 = vcmp.eq.s32.totalorder %v25_v26, %v34_v35 }
  0x89   :  { %v64_v37 = vadd.f32 %v322_v36, %v57_v33  ;;  %v323_v38 = vsel %vm68_vm7, 1.0, %v418_v6  ;;  %v318_v39 = vsel %vm35_vm8, 1.0, %v418_v6 }
  0x8a   :  { %377 = vmatprep.mubr.msk.f32.mxu1 %vm79_vm6, %v318_v39 }
  0x8b   :  { %v71_v40 = vadd.f32 %v323_v38, %v64_v37 }
  0x8c   :  { %v28_v41 = vpop.permute.xlu1 %27 }
  0x8d   :  { %vm29_vm9 = vcmp.eq.s32.totalorder %v25_v26, %v28_v41  ;;  %378 = vmatmul.mubr.msk.f32.vlgmr.msra.gmra.mxu1 %vm79_vm6, %v71_v40 }
  0x8e   :  { %v317_v42 = vsel %vm29_vm9, 1.0, %v418_v6 }
  0x8f   :  { %361 = vmatmul.mubr.msk.f32.vlgmr.msra.gmra.mxu0 %vm79_vm6, %v317_v42 }
 0x14d   :  { %v379_v43 = vpop.f32.mrf.mxu1 }
 0x14f   :  { %v153_v44 = vpop.f32.mrf.mxu0  ;;  %v239_v45 = vpop.f32.mrf.mxu1 }
 0x150   :  { %v253_v46 = vmul.f32 %v379_v43, %v153_v44  ;;  %v248_v47 = vmul.f32 %v239_v45, %v153_v44 }
 0x151   :  { %v362_v48 = vpop.f32.mrf.mxu0 }
 0x152   :  { %v254_v49 = vsel %vm249_vm10, %v253_v46, 0.0  ;;  %v250_v50 = vsel %vm249_vm10, %v248_v47, 0.0 }
 0x153   :  { %255 = vadd.xlane.f32.xlu1 %v254_v49  ;;  %251 = vadd.xlane.f32.xlu0 %v250_v50 }
 0x1dc   :  { %v256_v51 = vpop.xlane.xlu1 %255  ;;  %v252_v52 = vpop.xlane.xlu0 %251 }
 0x1dd   :  { %v272_v53 = vsub.f32 0.0, %v256_v51  ;;  %v258_v54 = vand.u32 2147483647, %v252_v52  ;;  %v257_v14 = vmin.f32 %v252_v52, 0.0 }
 0x1df   :  { %v274_v55 = vand.u32 2147483647, %v272_v53  ;;  %v259_v56 = vsub.f32 0.0, %v258_v54  ;;  %v273_v13 = vmin.f32 %v272_v53, 0.0 }
 0x1e1   :  { %v275_v57 = vsub.f32 0.0, %v274_v55  ;;  %v260_v58 = vmul.f32 1.442695, %v259_v56 }
 0x1e3   :  { %v276_v59 = vmul.f32 1.442695, %v275_v57  ;;  %398 = vpow2.f32 %v260_v58 }
 0x1e5   :  { %400 = vpow2.f32 %v276_v59 }
 0x1f0   :  { %v399_v60 = vpop.eup %398 }
 0x1f1   :  { %v262_v61 = vadd.f32 1.0, %v399_v60  ;;  %v265_v0 = vmul.f32 -0.5, %v399_v60  ;;  %v268_v3 = vand.u32 2147483647, %v399_v60 }
 0x1f2   :  { %v401_v62 = vpop.eup %400 }
 0x1f3   :  { %v278_v63 = vadd.f32 1.0, %v401_v62  ;;  %402 = vlog2.f32 %v262_v61  ;;  %v281_v1 = vmul.f32 -0.5, %v401_v62  ;;  %v266_v2 = vadd.f32 1.0, %v265_v0 }
 0x1f4   :  { %v284_v6 = vand.u32 2147483647, %v401_v62  ;;  %vm269_vm11 = vcmp.lt.f32.partialorder %v268_v3, 0.0004427343 }
 0x1f5   :  { %404 = vlog2.f32 %v278_v63  ;;  %v282_v4 = vadd.f32 1.0, %v281_v1  ;;  %v267_v8 = vmul.f32 %v399_v60, %v266_v2 }
 0x1f6   :  { %vm285_vm12 = vcmp.lt.f32.partialorder %v284_v6, 0.0004427343 }
 0x1f7   :  { %v283_v11 = vmul.f32 %v401_v62, %v282_v4 }
 0x200   :  { %v403_v5 = vpop.eup %402 }
 0x201   :  { %v264_v7 = vmul.f32 0.6931472, %v403_v5 }
 0x202   :  { %v405_v9 = vpop.eup %404 }
 0x203   :  { %v280_v10 = vmul.f32 0.6931472, %v405_v9  ;;  %v270_v12 = vsel %vm269_vm11, %v267_v8, %v264_v7 }
 0x204   :  { %v271_v17 = vsub.f32 %v257_v14, %v270_v12 }
 0x205   :  { %v286_v15 = vsel %vm285_vm12, %v283_v11, %v280_v10 }
 0x206   :  { %v287_v16 = vsub.f32 %v273_v13, %v286_v15 }
 0x208   :  { %v288_v18 = vadd.f32 %v287_v16, %v271_v17 }
 0x20a   :  { %v290_v19 = vsel %vm289_vm13, %v288_v18, 0.0 }
 0x20b   :  { %291 = vadd.xlane.f32.xlu0 %v290_v19 }
 0x294   :  { %v292_v20 = vpop.xlane.xlu0 %291 }
 0x295   :  { %v293_v21 = vrot.slane %v292_v20, 4 }
 0x297   :  { %v294_v22 = vadd.f32 %v293_v21, %v292_v20 }
 0x299   :  { %v295_v23 = vrot.slane %v294_v22, 2 }
 0x29b   :  { %v296_v24 = vadd.f32 %v295_v23, %v294_v22 }
 0x29d   :  { %v297_v25 = vrot.slane %v296_v24, 1 }
 0x29f   :  { %v298_v26 = vadd.f32 %v297_v25, %v296_v24 }
 0x2a1   :  { %380 = vpush %v298_v26 }
 0x2d2   :  { %s381_s3 = spop %380 }
 0x2d3   :  { %s300_s4 = ssub.f32 0.0, %s381_s3 }
 0x2d5   :  { %s301_s24 = smul.f32 0.125, %s300_s4 }
 0x2d7   :  { %303 = sst [smem:[#allocation2]] %s301_s24 }
 0x2d8   :  { %311 = dma.smem_to_hbm %s423_s25, 16, %s528_s5, [#allocation3]  }
 0x2d9   :  { %414 = dma.done.wait [#allocation3], 16  }
 0x2da   :  { %415 = vsyncadd [#allocation3], 4294967280 }
 0x2db   :  { %315 = sfence }
 0x2dc   :  { %316 = vsyncpa [#allocation3], 1 }

</bundles_post_ra>
